<compile_context>
chip_gen: v7x
topology: tpu7x:2x2x1
jax: 0.10.0
libtpu: 0.0.40
codegen_flags: <defaults>
</compile_context>

<pallas_src>
import functools
import math

import jax
import jax.numpy as jnp
from jax.experimental import pallas as pl
from jax.experimental.pallas import tpu as pltpu


def _dma_flatten_kernel(x_ref, o_ref, sem, *, chunk, last_chunk, num_chunks):
    """Copy one row-chunk of the (N, flat) slab HBM -> HBM via async DMA."""
    i = pl.program_id(0)
    start = i * chunk

    def copy(size):
        cp = pltpu.make_async_copy(
            x_ref.at[pl.ds(start, size)],
            o_ref.at[pl.ds(start, size)],
            sem,
        )
        cp.start()
        cp.wait()

    if last_chunk == chunk:
        # Rows divide evenly into chunks: single unconditional path.
        copy(chunk)
    else:
        @pl.when(i < num_chunks - 1)
        def _full():
            copy(chunk)

        @pl.when(i == num_chunks - 1)
        def _ragged():
            copy(last_chunk)


def flatten_layer(x: jax.Array, *, max_chunks: int = 4) -> jax.Array:
    """Pallas equivalent of FlattenLayer.forward: x.view(x.shape[0], -1)."""
    n = x.shape[0]
    flat = math.prod(x.shape[1:]) if x.ndim > 1 else 1
    total = n * flat

    # Free row-major metadata reshape: (N, C, H, W, ...) -> (N, flat).
    x2d = x.reshape(n, flat)

    # A few row chunks: >=2 whenever possible so both v7x TensorCores issue
    # DMAs; chunk sizes are static, ragged tail handled inside the kernel.
    num_chunks = max(1, min(n, max_chunks))
    chunk = pl.cdiv(n, num_chunks)
    num_chunks = pl.cdiv(n, chunk)
    last_chunk = n - (num_chunks - 1) * chunk

    kernel = functools.partial(
        _dma_flatten_kernel,
        chunk=chunk,
        last_chunk=last_chunk,
        num_chunks=num_chunks,
    )

    out2d = pl.pallas_call(
        kernel,
        out_shape=jax.ShapeDtypeStruct((n, flat), x.dtype),
        grid=(num_chunks,),
        in_specs=[pl.BlockSpec(memory_space=pl.ANY)],   # raw HBM ref, no auto-DMA
        out_specs=pl.BlockSpec(memory_space=pl.ANY),    # raw HBM ref, written via DMA
        scratch_shapes=[pltpu.SemaphoreType.DMA(())],
        compiler_params=pltpu.CompilerParams(
            dimension_semantics=("parallel",)),
        cost_estimate=pl.CostEstimate(
            flops=0,
            transcendentals=0,
            bytes_accessed=2 * total * x.dtype.itemsize),
    )(x2d)

    # Output already has the torch .view(N, -1) shape.
    return out2d


if __name__ == "__main__":
    key = jax.random.PRNGKey(0)
    # Small NCHW input consistent with typical conv feature maps.
    x = jax.random.normal(key, (2, 4, 16, 16), dtype=jnp.float32)

    y = flatten_layer(x)
    y = jax.block_until_ready(y)

    # Reference check against plain JAX reshape (== torch .view(N, -1)).
    y_ref = x.reshape(x.shape[0], -1)
    assert y.shape == (2, 4 * 16 * 16), y.shape
    assert y.dtype == x.dtype
    assert bool(jnp.array_equal(y, y_ref))

    print("KERNEL_OK")
</pallas_src>

<mosaic_0001>
module attributes {stable_mosaic.version = 11 : i64} {
  func.func @_dma_flatten_kernel(%arg0: i32, %arg1: memref<2x1024xf32, #tpu.memory_space<any>>, %arg2: memref<2x1024xf32, #tpu.memory_space<any>>, %arg3: memref<!tpu.dma_semaphore, #tpu.memory_space<semaphore_mem>>) attributes {dimension_semantics = [#tpu.dimension_semantics<parallel>], iteration_bounds = array<i64: 2>, scalar_prefetch = 0 : i64, scratch_operands = 1 : i64, tpu.core_type = #tpu.core_type<tc>, window_params = [{}, {}]} {
    %c1_i32 = arith.constant 1 : i32
    %0 = arith.muli %arg0, %c1_i32 : i32
    %c0_i32 = arith.constant 0 : i32
    %1 = tpu.memref_slice %arg1[%0, %c0_i32] : memref<2x1024xf32, #tpu.memory_space<any>> -> memref<1x1024xf32, #tpu.memory_space<any>>
    %c0_i32_0 = arith.constant 0 : i32
    %2 = tpu.memref_slice %arg2[%0, %c0_i32_0] : memref<2x1024xf32, #tpu.memory_space<any>> -> memref<1x1024xf32, #tpu.memory_space<any>>
    tpu.enqueue_dma source(%1 : memref<1x1024xf32, #tpu.memory_space<any>>) target(%2 : memref<1x1024xf32, #tpu.memory_space<any>>) target_semaphore(%arg3 : memref<!tpu.dma_semaphore, #tpu.memory_space<semaphore_mem>>)
    %c0_i32_1 = arith.constant 0 : i32
    %3 = tpu.memref_slice %arg1[%0, %c0_i32_1] : memref<2x1024xf32, #tpu.memory_space<any>> -> memref<1x1024xf32, #tpu.memory_space<any>>
    %c0_i32_2 = arith.constant 0 : i32
    %4 = tpu.memref_slice %arg2[%0, %c0_i32_2] : memref<2x1024xf32, #tpu.memory_space<any>> -> memref<1x1024xf32, #tpu.memory_space<any>>
    tpu.wait_dma2 semaphore(%arg3 : memref<!tpu.dma_semaphore, #tpu.memory_space<semaphore_mem>>) src(%3 : memref<1x1024xf32, #tpu.memory_space<any>>) dst(%4 : memref<1x1024xf32, #tpu.memory_space<any>>)
    return
  }
}

</mosaic_0001>

<bundles_post_ra>
// kernel: tpu_custom_call.1
= control target key start
LH: loop header
LB: loop body
LE: loop exit
PB: predicated region body
PF: predicated region fallthrough
CT: control target
= control target key end

     0   :  { %s85_s6 = smov 0   ;;  %s110_s0 = inlined_call_operand.hbm [shape: f32[2,1024], index: 0, kind: input, shape index: {}]   ;;  %s111_s1 = inlined_call_operand.hbm [shape: f32[2,1024], index: 1, kind: output, shape index: {}]  }
   0x1 LB: > { %s13_s7 = sshrl.u32 %s87_s6, 1  ;;  %s14_s8 = sand.u32 1, %s87_s6   ;;  %s87_s6 = sphi %s85_s6, %s11_s6  }
   0x2   : > { %s62_s9 = sshll.u32 %s13_s7, 4  ;;  %s89_s11 = smov 32  }
   0x3   : > { %s16_s10 = sadd.s32 %s62_s9, %s14_s8  ;;  %33 = sst [smem:[#allocation4]] %s89_s11 }
   0x4   : > { %s63_s12 = sshll.u32 %s16_s10, 4  ;;  %35 = sst [smem:[#allocation4 + $0x1]] %s89_s11 }
   0x5   : > { %s18_s15 = scalar_lea.hbm %s110_s0, %s63_s12  ;;  %s20_s18 = scalar_lea.hbm %s111_s1, %s63_s12 }
   0x6   : > { %s90_s19 = smov 1   ;;  %s91_s20 = smov [#allocation2]  }
   0x7   : > { %37 = sst [smem:[#allocation4 + $0x2]] %s90_s19  ;;  %s92_s21 = smov [#allocation3]  }
   0x8   : > { %s93_s22 = smov 0  }
   0x9   : > { %39 = dma.general %s18_s15, 128, %s20_s18, %s91_s20, %s92_s21, [#allocation4], %s93_s22, 0  }
   0xa   : > { %83 = dma.done.wait [#allocation2], 128 }
   0xb   : > { %84 = vsyncadd [#allocation2], 4294967168  ;;  %s11_s6 = sadd.s32 1, %s87_s6  }
   0xc   : > { %p8_p0 = scmp.ge.s32.totalorder %s11_s6, 2  }
   0xe   :  { %10 = sbr.rel (!%p8_p0) target bundleno = 1 (0x1), region = 23 }
  0x15   :  { %43 = vsyncmov [#allocation2] }
  0x18   :  { %s44_s23 = vpop.sfrf %43 }
  0x19   :  { %p65_p1 = scmp.ne.s32.totalorder %s44_s23, 0 }
  0x1b   :  { %48 = shalt.err (%p65_p1)  }

</bundles_post_ra>
